<compile_context>
chip_gen: v7x
topology: tpu7x:2x2x1
jax: 0.10.0
libtpu: 0.0.40
codegen_flags: <defaults>
</compile_context>

<pallas_src>
import functools

import jax
import jax.numpy as jnp
from jax.experimental import pallas as pl
from jax.experimental.pallas import tpu as pltpu


# ---------------------------------------------------------------------------
# VMEM budgeting (generation aware).
# ---------------------------------------------------------------------------
def _vmem_budget():
    """Returns (vmem_limit_bytes, tile_sizing_budget_bytes)."""
    cap = 0
    try:
        cap = int(pltpu.get_tpu_info().vmem_capacity_bytes)
    except Exception:
        cap = 0
    if cap <= 0:
        cap = 64 * 1024 * 1024          # v7x-sized conservative fallback
    limit = (cap * 85) // 100           # compiler scoped-VMEM limit
    sizing = (cap * 65) // 100          # bytes we actually plan to occupy
    return limit, sizing


def _row_tile_params(n, c, stream_bytes_per_elem, budget):
    """Row tile TR and inner f32 chunk for the large-C (row-major) path."""
    if n <= 8:
        return int(n), int(n)
    # Half the budget for the double-buffered input streams, half for the f32
    # temporaries (logits/labels/shifted/exp/contrib) of ONE chunk.
    temp_budget = budget // 2
    stream_budget = budget // 2
    chunk = temp_budget // (6 * c * 4)
    chunk = max(8, min(256, (chunk // 8) * 8))
    chunk = min(chunk, (n // 8) * 8)                    # never exceed array
    per_row_stream = 2 * c * stream_bytes_per_elem      # 2 = double buffering
    tr = stream_budget // max(per_row_stream, 1)
    tr = max(chunk, min(4096, (tr // chunk) * chunk))
    tr = min(tr, (n // chunk) * chunk)                  # block never > array
    tr = max(tr, chunk)
    return int(tr), int(chunk)


def _col_tile_params(n, c, stream_bytes_per_elem, budget):
    """Lane tile TN for the small-C (transposed, class-on-sublane) path."""
    if n <= 128:
        return int(n)
    c_pad = ((c + 31) // 32) * 32                       # sublane-padding bound
    per_col = 2 * c_pad * stream_bytes_per_elem + 5 * c_pad * 4
    tn = budget // max(per_col, 1)
    tn = max(128, min(1 << 16, (tn // 128) * 128))
    tn = min(tn, (n // 128) * 128)                      # block never > array
    return int(tn)


# ---------------------------------------------------------------------------
# Kernels.
# ---------------------------------------------------------------------------
def _row_kernel(pred_ref, label_ref, psum_ref, *, n, tr, chunk, mask):
    """(TR, C) row tile -> (1, C) per-class partial sum of label*log_softmax."""
    c = psum_ref.shape[-1]
    row_base = pl.program_id(0) * tr

    def chunk_contrib(j, acc):
        start = pl.multiple_of(j * chunk, chunk)
        x = pred_ref[pl.ds(start, chunk), :].astype(jnp.float32)
        lab = label_ref[pl.ds(start, chunk), :].astype(jnp.float32)
        if mask:
            rows = (row_base + start
                    + jax.lax.broadcasted_iota(jnp.int32, (chunk, 1), 0))
            valid = rows < n
            # Mask BEFORE the exp so garbage out-of-bounds rows stay finite;
            # zeroed labels make their contribution exactly 0.
            x = jnp.where(valid, x, 0.0)
            lab = jnp.where(valid, lab, 0.0)
        m = jnp.max(x, axis=-1, keepdims=True)
        shifted = x - m
        lse = jnp.log(jnp.sum(jnp.exp(shifted), axis=-1, keepdims=True))
        log_sm = shifted - lse
        return acc + jnp.sum(lab * log_sm, axis=0, keepdims=True)

    acc0 = jnp.zeros((1, c), jnp.float32)
    n_chunks = tr // chunk
    if n_chunks == 1:
        acc = chunk_contrib(0, acc0)
    else:
        acc = jax.lax.fori_loop(0, n_chunks, chunk_contrib, acc0,
                                unroll=n_chunks <= 8)
    psum_ref[...] = acc


def _col_kernel(pred_ref, label_ref, psum_ref, *, n, tn, mask):
    """(C, TN) column tile -> (C, 1) per-class partial sum (small-C path)."""
    x = pred_ref[...].astype(jnp.float32)
    lab = label_ref[...].astype(jnp.float32)
    if mask:
        cols = (pl.program_id(0) * tn
                + jax.lax.broadcasted_iota(jnp.int32, (1, tn), 1))
        valid = cols < n
        x = jnp.where(valid, x, 0.0)
        lab = jnp.where(valid, lab, 0.0)
    m = jnp.max(x, axis=0, keepdims=True)               # sublane reduce
    shifted = x - m
    lse = jnp.log(jnp.sum(jnp.exp(shifted), axis=0, keepdims=True))
    log_sm = shifted - lse
    psum_ref[...] = jnp.sum(lab * log_sm, axis=1, keepdims=True)


# ---------------------------------------------------------------------------
# Wrapper.
# ---------------------------------------------------------------------------
def softmax_cross_entropy_loss(prediction, label, weight):
    """prediction, label: (..., C); weight: (C,) or (1, C). Returns f32 scalar."""
    prediction = jnp.asarray(prediction)
    label = jnp.asarray(label)
    w = jnp.asarray(weight, jnp.float32).reshape(-1)

    c = prediction.shape[-1]
    assert label.shape == prediction.shape
    assert w.shape[0] == c

    pred2 = prediction.reshape(-1, c)
    lab2 = label.reshape(-1, c)
    n = pred2.shape[0]
    total = n * c

    vmem_limit, sizing_budget = _vmem_budget()
    stream_bpe = pred2.dtype.itemsize + lab2.dtype.itemsize

    cost = pl.CostEstimate(
        flops=int(8 * total),
        transcendentals=int(total + n),
        bytes_accessed=int(total * stream_bpe + 4 * c),
    )
    cparams = pltpu.CompilerParams(
        dimension_semantics=("parallel",),
        vmem_limit_bytes=int(vmem_limit),
    )

    if c >= 128:
        # ---- Large-C path: classes on the lane axis, rows tiled. ----------
        tr, chunk = _row_tile_params(n, c, stream_bpe, sizing_budget)
        num_tiles = pl.cdiv(n, tr)
        kernel = functools.partial(_row_kernel, n=n, tr=tr, chunk=chunk,
                                   mask=(n % tr) != 0)
        partials = pl.pallas_call(
            kernel,
            out_shape=jax.ShapeDtypeStruct((num_tiles, 1, c), jnp.float32),
            grid=(num_tiles,),
            in_specs=[
                pl.BlockSpec((tr, c), lambda i: (i, 0)),
                pl.BlockSpec((tr, c), lambda i: (i, 0)),
            ],
            out_specs=pl.BlockSpec((None, 1, c), lambda i: (i, 0, 0)),
            compiler_params=cparams,
            cost_estimate=cost,
        )(pred2, lab2)
        per_class = jnp.sum(partials, axis=(0, 1))
    else:
        # ---- Small-C path: transpose to (C, N) so the class reduce is a ----
        # sublane reduce and the large N axis is lane-dense.
        pred_t = pred2.T
        lab_t = lab2.T
        tn = _col_tile_params(n, c, stream_bpe, sizing_budget)
        num_tiles = pl.cdiv(n, tn)
        kernel = functools.partial(_col_kernel, n=n, tn=tn,
                                   mask=(n % tn) != 0)
        partials = pl.pallas_call(
            kernel,
            out_shape=jax.ShapeDtypeStruct((num_tiles, c, 1), jnp.float32),
            grid=(num_tiles,),
            in_specs=[
                pl.BlockSpec((c, tn), lambda i: (0, i)),
                pl.BlockSpec((c, tn), lambda i: (0, i)),
            ],
            out_specs=pl.BlockSpec((None, c, 1), lambda i: (i, 0, 0)),
            compiler_params=cparams,
            cost_estimate=cost,
        )(pred_t, lab_t)
        per_class = jnp.sum(partials, axis=(0, 2))

    # Per-class weight applied once here (it commutes out of the row sum);
    # mean divides by the true, un-padded element count (torch's .mean()).
    return -(jnp.sum(per_class * w) / jnp.float32(total))


def _reference(prediction, label, weight):
    log_sm = jax.nn.log_softmax(jnp.asarray(prediction, jnp.float32), axis=-1)
    w = jnp.asarray(weight, jnp.float32).reshape(1, -1)
    return -jnp.mean(w * jnp.asarray(label, jnp.float32) * log_sm)


if __name__ == "__main__":
    key = jax.random.PRNGKey(0)
    k1, k2, k3, k4, k5, k6 = jax.random.split(key, 6)

    # Case 1: module-default weight (C=4), 3-D batch (2, 4, 4). Small-C path.
    weight_a = jnp.array([1.0, 1.0, 1.0, 1.0], dtype=jnp.float32)
    pred_a = jax.random.normal(k1, (2, 4, 4), dtype=jnp.float32)
    lab_a = jax.nn.softmax(
        jax.random.normal(k2, (2, 4, 4), dtype=jnp.float32), axis=-1)
    out_a = jax.block_until_ready(
        softmax_cross_entropy_loss(pred_a, lab_a, weight_a))
    ref_a = _reference(pred_a, lab_a, weight_a)
    assert jnp.allclose(out_a, ref_a, rtol=1e-4, atol=1e-6), (out_a, ref_a)

    # Case 2: ragged row count (13) + non-uniform weight. Small-C path.
    weight_b = jnp.array([0.5, 1.0, 1.5, 2.0], dtype=jnp.float32)
    pred_b = jax.random.normal(k3, (13, 4), dtype=jnp.float32)
    lab_b = jax.nn.softmax(
        jax.random.normal(k4, (13, 4), dtype=jnp.float32), axis=-1)
    out_b = jax.block_until_ready(
        softmax_cross_entropy_loss(pred_b, lab_b, weight_b))
    ref_b = _reference(pred_b, lab_b, weight_b)
    assert jnp.allclose(out_b, ref_b, rtol=1e-4, atol=1e-6), (out_b, ref_b)

    # Case 3: larger class count (C=256) in bf16 -> row-tiled path with the
    # inner f32 chunk loop and in-kernel masking of the ragged last tile.
    C3, N3 = 256, 600
    weight_c = jnp.linspace(0.5, 1.5, C3, dtype=jnp.float32)
    pred_c = jax.random.normal(k5, (N3, C3), dtype=jnp.bfloat16)
    lab_c = jax.nn.softmax(
        jax.random.normal(k6, (N3, C3), dtype=jnp.float32), axis=-1
    ).astype(jnp.bfloat16)
    out_c = jax.block_until_ready(
        softmax_cross_entropy_loss(pred_c, lab_c, weight_c))
    ref_c = _reference(pred_c, lab_c, weight_c)
    assert jnp.allclose(out_c, ref_c, rtol=1e-3, atol=1e-5), (out_c, ref_c)

    print("KERNEL_OK")
</pallas_src>

<mosaic_0001>
module attributes {stable_mosaic.version = 11 : i64} {
  func.func @_col_kernel(%arg0: i32, %arg1: memref<4x8xf32, #tpu.memory_space<vmem>>, %arg2: memref<4x8xf32, #tpu.memory_space<vmem>>, %arg3: memref<1x4x1xf32, #tpu.memory_space<vmem>>) attributes {dimension_semantics = [#tpu.dimension_semantics<parallel>], iteration_bounds = array<i64: 1>, scalar_prefetch = 0 : i64, scratch_operands = 0 : i64, tpu.core_type = #tpu.core_type<tc>, window_params = [{transform_indices = @transform_0, window_bounds = array<i64: 4, 8>}, {transform_indices = @transform_1, window_bounds = array<i64: 4, 8>}, {transform_indices = @transform_2, window_bounds = array<i64: 1, 4, 1>}]} {
    %c0 = arith.constant 0 : index
    %c0_0 = arith.constant 0 : index
    %0 = vector.load %arg1[%c0, %c0_0] : memref<4x8xf32, #tpu.memory_space<vmem>>, vector<4x8xf32>
    %c0_1 = arith.constant 0 : index
    %c0_2 = arith.constant 0 : index
    %1 = vector.load %arg2[%c0_1, %c0_2] : memref<4x8xf32, #tpu.memory_space<vmem>>, vector<4x8xf32>
    %cst = arith.constant dense<0xFF800000> : vector<8xf32>
    %2 = vector.multi_reduction <maximumf>, %0, %cst [0] : vector<4x8xf32> to vector<8xf32>
    %3 = vector.shape_cast %2 : vector<8xf32> to vector<1x8xf32>
    %4 = vector.broadcast %3 : vector<1x8xf32> to vector<4x8xf32>
    %5 = arith.subf %0, %4 : vector<4x8xf32>
    %6 = math.exp %5 : vector<4x8xf32>
    %cst_3 = arith.constant dense<0.000000e+00> : vector<8xf32>
    %7 = vector.multi_reduction <add>, %6, %cst_3 [0] : vector<4x8xf32> to vector<8xf32>
    %8 = vector.shape_cast %7 : vector<8xf32> to vector<1x8xf32>
    %9 = math.log %8 : vector<1x8xf32>
    %10 = vector.broadcast %9 : vector<1x8xf32> to vector<4x8xf32>
    %11 = arith.subf %5, %10 : vector<4x8xf32>
    %12 = arith.mulf %1, %11 : vector<4x8xf32>
    %cst_4 = arith.constant dense<0.000000e+00> : vector<4xf32>
    %13 = vector.multi_reduction <add>, %12, %cst_4 [1] : vector<4x8xf32> to vector<4xf32>
    %14 = vector.shape_cast %13 : vector<4xf32> to vector<4x1xf32>
    %c0_5 = arith.constant 0 : index
    %c0_6 = arith.constant 0 : index
    %c0_7 = arith.constant 0 : index
    %15 = vector.load %arg3[%c0_5, %c0_6, %c0_7] : memref<1x4x1xf32, #tpu.memory_space<vmem>>, vector<1x4x1xf32>
    %16 = vector.shape_cast %15 : vector<1x4x1xf32> to vector<4x1xf32>
    %17 = vector.shape_cast %14 : vector<4x1xf32> to vector<1x4x1xf32>
    tpu.vector_store %arg3[%c0_5, %c0_6, %c0_7], %17 {strides = array<i32>} : memref<1x4x1xf32, #tpu.memory_space<vmem>>, vector<1x4x1xf32>,
    return
  }
  func.func @transform_0(%arg0: i32) -> (i32, i32) {
    %c0_i32 = arith.constant 0 : i32
    %c0_i32_0 = arith.constant 0 : i32
    return %c0_i32, %arg0 : i32, i32
  }
  func.func @transform_1(%arg0: i32) -> (i32, i32) {
    %c0_i32 = arith.constant 0 : i32
    %c0_i32_0 = arith.constant 0 : i32
    return %c0_i32, %arg0 : i32, i32
  }
  func.func @transform_2(%arg0: i32) -> (i32, i32, i32) {
    %c0_i32 = arith.constant 0 : i32
    %c0_i32_0 = arith.constant 0 : i32
    %c0_i32_1 = arith.constant 0 : i32
    return %arg0, %c0_i32, %c0_i32_0 : i32, i32, i32
  }
}

</mosaic_0001>

<bundles_post_ra>
// kernel: tpu_custom_call.1
= control target key start
LH: loop header
LB: loop body
LE: loop exit
PB: predicated region body
PF: predicated region fallthrough
CT: control target
= control target key end

     0   :  { %7 = vsyncpa [#allocation3], 0  ;;  %s171_s0 = inlined_call_operand.hbm [shape: f32[4,8], index: 0, kind: input, shape index: {}]   ;;  %s172_s1 = inlined_call_operand.hbm [shape: f32[4,8], index: 1, kind: input, shape index: {}]   ;;  %s173_s2 = inlined_call_operand.vmem [shape: f32[1,4,1], index: 2, kind: output, shape index: {}]  }
   0x1   :  { %8 = vsyncpa [#allocation5], 0  ;;  %s124_s9 = smov [#allocation2]   ;;  %s125_s11 = smov [#allocation4]  }
   0x2   :  { %s15_s10 = sshll.u32 %s124_s9, 4  ;;  %s25_s12 = sshll.u32 %s125_s11, 4  ;;  %s16_s10 = int_to_ptr.vmem [resolvable:$true] %s15_s10  ;;  %s26_s12 = int_to_ptr.vmem [resolvable:$true] %s25_s12 }
   0x3   :  { %s76_s15 = scalar_lea.hbm %s171_s0, 64 }
   0x4   :  { %p77_p0 = scmp.ne.s32.totalorder %s171_s0, %s76_s15  ;;  %p80_p1 = scmp.lt.u32.totalorder %s76_s15, %s171_s0 }
   0x6   :  { %p82_p2 = pnand %p80_p1, %p77_p0 }
   0x8   :  { %85 = shalt.err (!%p82_p2)
}
   0x9   :  { %s86_s20 = scalar_lea.vmem %s16_s10, 64  ;;  %p91_p4 = scmp.lt.s32.totalorder %s16_s10, %s16_s10 }
   0xa   :  { %p87_p3 = scmp.ne.s32.totalorder %s16_s10, %s86_s20  ;;  %p92_p5 = scmp.lt.s32.totalorder %s86_s20, %s86_s20 }
   0xc   :  { %p93_p6 = por %p92_p5, %p91_p4 }
   0xe   :  { %p94_p7 = pnand %p93_p6, %p87_p3 }
  0x10   :  { %97 = shalt.err (!%p94_p7)
}
  0x11   :  { %18 = dma.hbm_to_vmem [thread:$0]  %s171_s0, 64, %s16_s10, [#allocation3]  }
  0x12   :  { %s98_s25 = scalar_lea.hbm %s172_s1, 64 }
  0x13   :  { %p99_p8 = scmp.ne.s32.totalorder %s172_s1, %s98_s25  ;;  %p102_p9 = scmp.lt.u32.totalorder %s98_s25, %s172_s1 }
  0x15   :  { %p104_p10 = pnand %p102_p9, %p99_p8 }
  0x17   :  { %107 = shalt.err (!%p104_p10)
}
  0x18   :  { %s108_s30 = scalar_lea.vmem %s26_s12, 64  ;;  %p113_p12 = scmp.lt.s32.totalorder %s26_s12, %s26_s12 }
  0x19   :  { %p109_p11 = scmp.ne.s32.totalorder %s26_s12, %s108_s30  ;;  %p114_p13 = scmp.lt.s32.totalorder %s108_s30, %s108_s30 }
  0x1b   :  { %p115_p0 = por %p114_p13, %p113_p12 }
  0x1d   :  { %p116_p1 = pnand %p115_p0, %p109_p11 }
  0x1f   :  { %119 = shalt.err (!%p116_p1)
}
  0x20   :  { %28 = dma.hbm_to_vmem [thread:$0]  %s172_s1, 64, %s26_s12, [#allocation5]  }
  0x21   :  { %120 = dma.done.wait [#allocation3], 64  }
  0x22   :  { %121 = vsyncadd [#allocation3], 4294967232 }
  0x23   :  { %122 = dma.done.wait [#allocation5], 64  }
  0x24   :  { %123 = vsyncadd [#allocation5], 4294967232  ;;  %vm37_vm0 = vcmask 60416   ;;  %v35_v0 = vld [vmem:[#allocation2] sm:$0xf]  ;;  %vm62_vm1 = vcmask 3072  }
  0x25   :  { %v38_v1 = vsel %vm37_vm0, %v35_v0, -inf  ;;  %v36_v20 = vld [vmem:[#allocation4] sm:$0xf] }
  0x26   :  { %v39_v2 = vrot.slane %v38_v1, 4 }
  0x28   :  { %v40_v3 = vmax.f32 %v38_v1, %v39_v2 }
  0x2a   :  { %v41_v4 = vrot.slane %v40_v3, 2 }
  0x2c   :  { %v42_v5 = vmax.f32 %v40_v3, %v41_v4 }
  0x2e   :  { %v43_v6 = vrot.slane %v42_v5, 1 }
  0x30   :  { %v44_v7 = vmax.f32 %v42_v5, %v43_v6 }
  0x32   :  { %v45_v8 = vsub.f32 %v35_v0, %v44_v7 }
  0x34   :  { %v46_v9 = vmul.f32 1.442695, %v45_v8 }
  0x36   :  { %72 = vpow2.f32 %v46_v9 }
  0x40   :  { %v73_v10 = vpop.eup %72 }
  0x41   :  { %v48_v11 = vsel %vm37_vm0, %v73_v10, 0.0 }
  0x42   :  { %v49_v12 = vrot.slane %v48_v11, 4 }
  0x44   :  { %v50_v13 = vadd.f32 %v49_v12, %v48_v11 }
  0x46   :  { %v51_v14 = vrot.slane %v50_v13, 2 }
  0x48   :  { %v52_v15 = vadd.f32 %v51_v14, %v50_v13 }
  0x4a   :  { %v53_v16 = vrot.slane %v52_v15, 1 }
  0x4c   :  { %v54_v17 = vadd.f32 %v53_v16, %v52_v15 }
  0x4e   :  { %74 = vlog2.f32 %v54_v17 }
  0x58   :  { %v75_v18 = vpop.eup %74 }
  0x59   :  { %v56_v19 = vmul.f32 0.6931472, %v75_v18 }
  0x5b   :  { %v57_v21 = vsub.f32 %v45_v8, %v56_v19 }
  0x5d   :  { %v58_v22 = vmul.f32 %v57_v21, %v36_v20 }
  0x5f   :  { %v59_v23 = vsel %vm37_vm0, %v58_v22, 0.0 }
  0x60   :  { %60 = vadd.xlane.f32.xlu0 %v59_v23 }
  0xed   :  { %v61_v24 = vpop.xlane.xlu0 %60 }
  0xee   :  { %63 = vst.msk [vmem:[%s173_s2] sm:$0xf] %vm62_vm1, %v61_v24 }
  0xef   :  { %68 = vsyncpa [#allocation3], 1 }
  0xf0   :  { %69 = vsyncpa [#allocation5], 1 }

</bundles_post_ra>
